<compile_context>
chip_gen: v7x
topology: tpu7x:2x2x1
jax: 0.10.0
libtpu: 0.0.40
codegen_flags: <defaults>
</compile_context>

<pallas_src>
import functools

import jax
import jax.numpy as jnp
from jax.experimental import pallas as pl
from jax.experimental.pallas import tpu as pltpu


def add_kernel(a_ref, b_ref, o_ref):
    # Single-step kernel: whole (1, 384, 256) tile resident in VMEM,
    # one VPU elementwise add, no grid / pipeline fill-drain overhead.
    o_ref[...] = a_ref[...] + b_ref[...]


@functools.partial(jax.jit, donate_argnums=(0,))
def pallas_add(x315, x281):
    assert x315.shape == x281.shape and x315.dtype == x281.dtype
    full = pl.BlockSpec(memory_space=pltpu.MemorySpace.VMEM)
    return pl.pallas_call(
        add_kernel,
        out_shape=jax.ShapeDtypeStruct(x315.shape, x315.dtype),
        in_specs=[full, full],
        out_specs=full,
        input_output_aliases={0: 0},  # write the result into x315's buffer
    )(x315, x281)


if __name__ == "__main__":
    key = jax.random.PRNGKey(0)
    k1, k2 = jax.random.split(key)
    # Shapes from the module: torch.Size([1, 384, 256])
    x315 = jax.random.normal(k1, (1, 384, 256), dtype=jnp.float32)
    x281 = jax.random.normal(k2, (1, 384, 256), dtype=jnp.float32)

    # Compute the reference BEFORE calling the kernel (x315 is donated).
    ref = x315 + x281

    out = jax.block_until_ready(pallas_add(x315, x281))

    assert out.shape == (1, 384, 256)
    assert out.dtype == jnp.float32
    assert jnp.allclose(out, ref, atol=1e-6, rtol=1e-6)

    print("KERNEL_OK")
</pallas_src>

<mosaic_0001>
module attributes {stable_mosaic.version = 11 : i64} {
  func.func @add_kernel(%arg0: memref<1x384x256xf32, #tpu.memory_space<vmem>>, %arg1: memref<1x384x256xf32, #tpu.memory_space<vmem>>, %arg2: memref<1x384x256xf32, #tpu.memory_space<vmem>>) attributes {dimension_semantics = [], scalar_prefetch = 0 : i64, scratch_operands = 0 : i64, tpu.core_type = #tpu.core_type<tc>} {
    %c0 = arith.constant 0 : index
    %c0_0 = arith.constant 0 : index
    %c0_1 = arith.constant 0 : index
    %0 = vector.load %arg0[%c0, %c0_0, %c0_1] : memref<1x384x256xf32, #tpu.memory_space<vmem>>, vector<1x384x256xf32>
    %c0_2 = arith.constant 0 : index
    %c0_3 = arith.constant 0 : index
    %c0_4 = arith.constant 0 : index
    %1 = vector.load %arg1[%c0_2, %c0_3, %c0_4] : memref<1x384x256xf32, #tpu.memory_space<vmem>>, vector<1x384x256xf32>
    %2 = arith.addf %0, %1 : vector<1x384x256xf32>
    %c0_5 = arith.constant 0 : index
    %c0_6 = arith.constant 0 : index
    %c0_7 = arith.constant 0 : index
    %3 = vector.load %arg2[%c0_5, %c0_6, %c0_7] : memref<1x384x256xf32, #tpu.memory_space<vmem>>, vector<1x384x256xf32>
    tpu.vector_store %arg2[%c0_5, %c0_6, %c0_7], %2 {strides = array<i32>} : memref<1x384x256xf32, #tpu.memory_space<vmem>>, vector<1x384x256xf32>,
    return
  }
}

</mosaic_0001>

<bundles_post_ra>
// kernel: pallas_add.1
= control target key start
LH: loop header
LB: loop body
LE: loop exit
PB: predicated region body
PF: predicated region fallthrough
CT: control target
= control target key end

     0   :  { %7 = vsyncpa [#allocation3], 0  ;;  %s584_s0 = inlined_call_operand.hbm [shape: f32[1,384,256], index: 0, kind: input, shape index: {}, may-alias: {0,2}]   ;;  %s585_s1 = inlined_call_operand.hbm [shape: f32[1,384,256], index: 1, kind: input, shape index: {}]   ;;  %s586_s2 = inlined_call_operand.hbm [shape: f32[1,384,256], index: 2, kind: output, shape index: {}, may-alias: {0,2}]  }
   0x1   :  { %8 = vsyncpa [#allocation6], 0 }
   0x2   :  { %9 = vsyncpa [#allocation4], 0  ;;  %s519_s9 = smov [#allocation2]   ;;  %s447_s13 = scalar_lea.hbm %s584_s0, 12288 }
   0x3   :  { %s15_s10 = sshll.u32 %s519_s9, 4  ;;  %p448_p0 = scmp.ne.s32.totalorder %s584_s0, %s447_s13  ;;  %s16_s10 = int_to_ptr.vmem [resolvable:$true] %s15_s10 }
   0x4   :  { %p451_p1 = scmp.lt.u32.totalorder %s447_s13, %s584_s0 }
   0x6   :  { %p453_p2 = pnand %p451_p1, %p448_p0 }
   0x8   :  { %456 = shalt.err (!%p453_p2)
}
   0x9   :  { %s457_s18 = scalar_lea.vmem %s16_s10, 12288  ;;  %p462_p4 = scmp.lt.s32.totalorder %s16_s10, %s16_s10 }
   0xa   :  { %p458_p3 = scmp.ne.s32.totalorder %s16_s10, %s457_s18  ;;  %p463_p5 = scmp.lt.s32.totalorder %s457_s18, %s457_s18 }
   0xc   :  { %p464_p6 = por %p463_p5, %p462_p4 }
   0xe   :  { %p465_p7 = pnand %p464_p6, %p458_p3 }
  0x10   :  { %468 = shalt.err (!%p465_p7)
}
  0x11   :  { %s520_s19 = smov 256   ;;  %s521_s20 = smov 16  }
  0x12   :  { %21 = dma.hbm_to_vmem [thread:$0]  %s584_s0, 12288, %s16_s10, [#allocation3], %s520_s19, %s520_s19, %s521_s20  }
  0x13   :  { %s522_s23 = smov [#allocation5]   ;;  %s469_s27 = scalar_lea.hbm %s585_s1, 12288 }
  0x14   :  { %s27_s24 = sshll.u32 %s522_s23, 4  ;;  %p470_p8 = scmp.ne.s32.totalorder %s585_s1, %s469_s27  ;;  %s28_s24 = int_to_ptr.vmem [resolvable:$true] %s27_s24 }
  0x15   :  { %p473_p9 = scmp.lt.u32.totalorder %s469_s27, %s585_s1 }
  0x17   :  { %p475_p10 = pnand %p473_p9, %p470_p8 }
  0x19   :  { %478 = shalt.err (!%p475_p10)
}
  0x1a   :  { %s479_s4 = scalar_lea.vmem %s28_s24, 12288  ;;  %p484_p12 = scmp.lt.s32.totalorder %s28_s24, %s28_s24 }
  0x1b   :  { %p480_p11 = scmp.ne.s32.totalorder %s28_s24, %s479_s4  ;;  %p485_p13 = scmp.lt.s32.totalorder %s479_s4, %s479_s4 }
  0x1d   :  { %p486_p0 = por %p485_p13, %p484_p12 }
  0x1f   :  { %p487_p1 = pnand %p486_p0, %p480_p11 }
  0x21   :  { %490 = shalt.err (!%p487_p1)
}
  0x22   :  { %33 = dma.hbm_to_vmem [thread:$0]  %s585_s1, 12288, %s28_s24, [#allocation6], %s520_s19, %s520_s19, %s521_s20  }
  0x23   :  { %513 = dma.done.wait [#allocation3], 12288  }
  0x24   :  { %514 = vsyncadd [#allocation3], 4294955008 }
  0x25   :  { %515 = dma.done.wait [#allocation6], 12288  }
  0x26   :  { %516 = vsyncadd [#allocation6], 4294955008  ;;  %v40_v0 = vld [vmem:[#allocation2] sm:$0xff]  ;;  %v41_v2 = vld [vmem:[#allocation2 + $0x8] sm:$0xff]  ;;  %s523_s1 = smov [#allocation7]  }
  0x27   :  { %v136_v1 = vld [vmem:[#allocation5] sm:$0xff]  ;;  %v137_v4 = vld [vmem:[#allocation5 + $0x8] sm:$0xff]  ;;  %v42_v5 = vld [vmem:[#allocation2 + $0x10] sm:$0xff]  ;;  %s429_s6 = sshll.u32 %s523_s1, 4  ;;  %s430_s6 = int_to_ptr.vmem [resolvable:$true] %s429_s6 }
  0x28   :  { %v232_v3 = vadd.f32 %v136_v1, %v40_v0  ;;  %v138_v6 = vld [vmem:[#allocation5 + $0x10] sm:$0xff]  ;;  %v233_v7 = vadd.f32 %v137_v4, %v41_v2  ;;  %v43_v9 = vld [vmem:[#allocation2 + $0x18] sm:$0xff]  ;;  %v44_v11 = vld [vmem:[#allocation2 + $0x20] sm:$0xff]  ;;  %s491_s7 = scalar_lea.vmem %s430_s6, 12288  ;;  %p496_p3 = scmp.lt.s32.totalorder %s430_s6, %s430_s6 }
  0x29   :  { %v234_v8 = vadd.f32 %v138_v6, %v42_v5  ;;  %v139_v10 = vld [vmem:[#allocation5 + $0x18] sm:$0xff]  ;;  %v140_v13 = vld [vmem:[#allocation5 + $0x20] sm:$0xff]  ;;  %v45_v14 = vld [vmem:[#allocation2 + $0x28] sm:$0xff]  ;;  %p492_p2 = scmp.ne.s32.totalorder %s430_s6, %s491_s7  ;;  %p497_p4 = scmp.lt.s32.totalorder %s491_s7, %s491_s7 }
  0x2a   :  { %328 = vst [vmem:[#allocation7] sm:$0xff] %v232_v3  ;;  %v235_v12 = vadd.f32 %v139_v10, %v43_v9  ;;  %v141_v15 = vld [vmem:[#allocation5 + $0x28] sm:$0xff]  ;;  %329 = vst [vmem:[#allocation7 + $0x8] sm:$0xff] %v233_v7  ;;  %v236_v16 = vadd.f32 %v140_v13, %v44_v11  ;;  %v46_v18 = vld [vmem:[#allocation2 + $0x30] sm:$0xff] }
  0x2b   :  { %330 = vst [vmem:[#allocation7 + $0x10] sm:$0xff] %v234_v8  ;;  %v237_v17 = vadd.f32 %v141_v15, %v45_v14  ;;  %v142_v19 = vld [vmem:[#allocation5 + $0x30] sm:$0xff]  ;;  %v47_v20 = vld [vmem:[#allocation2 + $0x38] sm:$0xff]  ;;  %v48_v23 = vld [vmem:[#allocation2 + $0x40] sm:$0xff]  ;;  %p498_p5 = por %p497_p4, %p496_p3 }
  0x2c   :  { %331 = vst [vmem:[#allocation7 + $0x18] sm:$0xff] %v235_v12  ;;  %v238_v21 = vadd.f32 %v142_v19, %v46_v18  ;;  %v143_v22 = vld [vmem:[#allocation5 + $0x38] sm:$0xff]  ;;  %v144_v24 = vld [vmem:[#allocation5 + $0x40] sm:$0xff]  ;;  %332 = vst [vmem:[#allocation7 + $0x20] sm:$0xff] %v236_v16 }
  0x2d   :  { %333 = vst [vmem:[#allocation7 + $0x28] sm:$0xff] %v237_v17  ;;  %v239_v25 = vadd.f32 %v143_v22, %v47_v20  ;;  %v240_v26 = vadd.f32 %v144_v24, %v48_v23  ;;  %v49_v27 = vld [vmem:[#allocation2 + $0x48] sm:$0xff]  ;;  %v50_v29 = vld [vmem:[#allocation2 + $0x50] sm:$0xff]  ;;  %v51_v32 = vld [vmem:[#allocation2 + $0x58] sm:$0xff]  ;;  %p499_p6 = pnand %p498_p5, %p492_p2 }
  0x2e   :  { %v145_v28 = vld [vmem:[#allocation5 + $0x48] sm:$0xff]  ;;  %334 = vst [vmem:[#allocation7 + $0x30] sm:$0xff] %v238_v21  ;;  %v146_v31 = vld [vmem:[#allocation5 + $0x50] sm:$0xff]  ;;  %v147_v33 = vld [vmem:[#allocation5 + $0x58] sm:$0xff] }
  0x2f   :  { %v241_v30 = vadd.f32 %v145_v28, %v49_v27  ;;  %335 = vst [vmem:[#allocation7 + $0x38] sm:$0xff] %v239_v25  ;;  %336 = vst [vmem:[#allocation7 + $0x40] sm:$0xff] %v240_v26  ;;  %v242_v34 = vadd.f32 %v146_v31, %v50_v29  ;;  %v243_v35 = vadd.f32 %v147_v33, %v51_v32  ;;  %v52_v36 = vld [vmem:[#allocation2 + $0x60] sm:$0xff]  ;;  %v53_v38 = vld [vmem:[#allocation2 + $0x68] sm:$0xff] }
  0x30   :  { %v148_v37 = vld [vmem:[#allocation5 + $0x60] sm:$0xff]  ;;  %v149_v40 = vld [vmem:[#allocation5 + $0x68] sm:$0xff]  ;;  %v54_v41 = vld [vmem:[#allocation2 + $0x70] sm:$0xff] }
  0x31   :  { %337 = vst [vmem:[#allocation7 + $0x48] sm:$0xff] %v241_v30  ;;  %v244_v39 = vadd.f32 %v148_v37, %v52_v36  ;;  %v150_v42 = vld [vmem:[#allocation5 + $0x70] sm:$0xff]  ;;  %338 = vst [vmem:[#allocation7 + $0x50] sm:$0xff] %v242_v34  ;;  %v245_v43 = vadd.f32 %v149_v40, %v53_v38  ;;  %v55_v45 = vld [vmem:[#allocation2 + $0x78] sm:$0xff] }
  0x32   :  { %339 = vst [vmem:[#allocation7 + $0x58] sm:$0xff] %v243_v35  ;;  %v246_v44 = vadd.f32 %v150_v42, %v54_v41  ;;  %v151_v46 = vld [vmem:[#allocation5 + $0x78] sm:$0xff]  ;;  %v56_v47 = vld [vmem:[#allocation2 + $0x80] sm:$0xff]  ;;  %v57_v50 = vld [vmem:[#allocation2 + $0x88] sm:$0xff] }
  0x33   :  { %340 = vst [vmem:[#allocation7 + $0x60] sm:$0xff] %v244_v39  ;;  %v247_v48 = vadd.f32 %v151_v46, %v55_v45  ;;  %v152_v49 = vld [vmem:[#allocation5 + $0x80] sm:$0xff]  ;;  %v153_v51 = vld [vmem:[#allocation5 + $0x88] sm:$0xff]  ;;  %341 = vst [vmem:[#allocation7 + $0x68] sm:$0xff] %v245_v43 }
  0x34   :  { %342 = vst [vmem:[#allocation7 + $0x70] sm:$0xff] %v246_v44  ;;  %v248_v52 = vadd.f32 %v152_v49, %v56_v47  ;;  %v249_v53 = vadd.f32 %v153_v51, %v57_v50  ;;  %v58_v54 = vld [vmem:[#allocation2 + $0x90] sm:$0xff]  ;;  %v59_v56 = vld [vmem:[#allocation2 + $0x98] sm:$0xff]  ;;  %v60_v59 = vld [vmem:[#allocation2 + $0xa0] sm:$0xff] }
  0x35   :  { %v154_v55 = vld [vmem:[#allocation5 + $0x90] sm:$0xff]  ;;  %343 = vst [vmem:[#allocation7 + $0x78] sm:$0xff] %v247_v48  ;;  %v155_v58 = vld [vmem:[#allocation5 + $0x98] sm:$0xff]  ;;  %v156_v60 = vld [vmem:[#allocation5 + $0xa0] sm:$0xff] }
  0x36   :  { %v250_v57 = vadd.f32 %v154_v55, %v58_v54  ;;  %344 = vst [vmem:[#allocation7 + $0x80] sm:$0xff] %v248_v52  ;;  %345 = vst [vmem:[#allocation7 + $0x88] sm:$0xff] %v249_v53  ;;  %v251_v61 = vadd.f32 %v155_v58, %v59_v56  ;;  %v252_v62 = vadd.f32 %v156_v60, %v60_v59  ;;  %v61_v63 = vld [vmem:[#allocation2 + $0xa8] sm:$0xff]  ;;  %v62_v1 = vld [vmem:[#allocation2 + $0xb0] sm:$0xff] }
  0x37   :  { %v157_v0 = vld [vmem:[#allocation5 + $0xa8] sm:$0xff]  ;;  %v158_v3 = vld [vmem:[#allocation5 + $0xb0] sm:$0xff]  ;;  %v63_v4 = vld [vmem:[#allocation2 + $0xb8] sm:$0xff] }
  0x38   :  { %346 = vst [vmem:[#allocation7 + $0x90] sm:$0xff] %v250_v57  ;;  %v253_v2 = vadd.f32 %v157_v0, %v61_v63  ;;  %v159_v5 = vld [vmem:[#allocation5 + $0xb8] sm:$0xff]  ;;  %347 = vst [vmem:[#allocation7 + $0x98] sm:$0xff] %v251_v61  ;;  %v254_v6 = vadd.f32 %v158_v3, %v62_v1  ;;  %v64_v8 = vld [vmem:[#allocation2 + $0xc0] sm:$0xff] }
  0x39   :  { %348 = vst [vmem:[#allocation7 + $0xa0] sm:$0xff] %v252_v62  ;;  %v255_v7 = vadd.f32 %v159_v5, %v63_v4  ;;  %v160_v9 = vld [vmem:[#allocation5 + $0xc0] sm:$0xff]  ;;  %v65_v10 = vld [vmem:[#allocation2 + $0xc8] sm:$0xff]  ;;  %v66_v13 = vld [vmem:[#allocation2 + $0xd0] sm:$0xff] }
  0x3a   :  { %349 = vst [vmem:[#allocation7 + $0xa8] sm:$0xff] %v253_v2  ;;  %v256_v11 = vadd.f32 %v160_v9, %v64_v8  ;;  %v161_v12 = vld [vmem:[#allocation5 + $0xc8] sm:$0xff]  ;;  %v162_v14 = vld [vmem:[#allocation5 + $0xd0] sm:$0xff]  ;;  %350 = vst [vmem:[#allocation7 + $0xb0] sm:$0xff] %v254_v6 }
  0x3b   :  { %351 = vst [vmem:[#allocation7 + $0xb8] sm:$0xff] %v255_v7  ;;  %v257_v15 = vadd.f32 %v161_v12, %v65_v10  ;;  %v258_v16 = vadd.f32 %v162_v14, %v66_v13  ;;  %v67_v17 = vld [vmem:[#allocation2 + $0xd8] sm:$0xff]  ;;  %v68_v19 = vld [vmem:[#allocation2 + $0xe0] sm:$0xff]  ;;  %v69_v22 = vld [vmem:[#allocation2 + $0xe8] sm:$0xff] }
  0x3c   :  { %v163_v18 = vld [vmem:[#allocation5 + $0xd8] sm:$0xff]  ;;  %352 = vst [vmem:[#allocation7 + $0xc0] sm:$0xff] %v256_v11  ;;  %v164_v21 = vld [vmem:[#allocation5 + $0xe0] sm:$0xff]  ;;  %v165_v23 = vld [vmem:[#allocation5 + $0xe8] sm:$0xff] }
  0x3d   :  { %v259_v20 = vadd.f32 %v163_v18, %v67_v17  ;;  %353 = vst [vmem:[#allocation7 + $0xc8] sm:$0xff] %v257_v15  ;;  %354 = vst [vmem:[#allocation7 + $0xd0] sm:$0xff] %v258_v16  ;;  %v260_v24 = vadd.f32 %v164_v21, %v68_v19  ;;  %v261_v25 = vadd.f32 %v165_v23, %v69_v22  ;;  %v70_v26 = vld [vmem:[#allocation2 + $0xf0] sm:$0xff]  ;;  %v71_v28 = vld [vmem:[#allocation2 + $0xf8] sm:$0xff] }
  0x3e   :  { %v166_v27 = vld [vmem:[#allocation5 + $0xf0] sm:$0xff]  ;;  %v167_v30 = vld [vmem:[#allocation5 + $0xf8] sm:$0xff]  ;;  %v72_v31 = vld [vmem:[#allocation2 + $0x100] sm:$0xff] }
  0x3f   :  { %355 = vst [vmem:[#allocation7 + $0xd8] sm:$0xff] %v259_v20  ;;  %v262_v29 = vadd.f32 %v166_v27, %v70_v26  ;;  %v168_v32 = vld [vmem:[#allocation5 + $0x100] sm:$0xff]  ;;  %356 = vst [vmem:[#allocation7 + $0xe0] sm:$0xff] %v260_v24  ;;  %v263_v33 = vadd.f32 %v167_v30, %v71_v28  ;;  %v73_v35 = vld [vmem:[#allocation2 + $0x108] sm:$0xff] }
  0x40   :  { %357 = vst [vmem:[#allocation7 + $0xe8] sm:$0xff] %v261_v25  ;;  %v264_v34 = vadd.f32 %v168_v32, %v72_v31  ;;  %v169_v36 = vld [vmem:[#allocation5 + $0x108] sm:$0xff]  ;;  %v74_v37 = vld [vmem:[#allocation2 + $0x110] sm:$0xff]  ;;  %v75_v40 = vld [vmem:[#allocation2 + $0x118] sm:$0xff] }
  0x41   :  { %358 = vst [vmem:[#allocation7 + $0xf0] sm:$0xff] %v262_v29  ;;  %v265_v38 = vadd.f32 %v169_v36, %v73_v35  ;;  %v170_v39 = vld [vmem:[#allocation5 + $0x110] sm:$0xff]  ;;  %v171_v41 = vld [vmem:[#allocation5 + $0x118] sm:$0xff]  ;;  %359 = vst [vmem:[#allocation7 + $0xf8] sm:$0xff] %v263_v33 }
  0x42   :  { %360 = vst [vmem:[#allocation7 + $0x100] sm:$0xff] %v264_v34  ;;  %v266_v42 = vadd.f32 %v170_v39, %v74_v37  ;;  %v267_v43 = vadd.f32 %v171_v41, %v75_v40  ;;  %v76_v44 = vld [vmem:[#allocation2 + $0x120] sm:$0xff]  ;;  %v77_v46 = vld [vmem:[#allocation2 + $0x128] sm:$0xff]  ;;  %v78_v49 = vld [vmem:[#allocation2 + $0x130] sm:$0xff] }
  0x43   :  { %v172_v45 = vld [vmem:[#allocation5 + $0x120] sm:$0xff]  ;;  %361 = vst [vmem:[#allocation7 + $0x108] sm:$0xff] %v265_v38  ;;  %v173_v48 = vld [vmem:[#allocation5 + $0x128] sm:$0xff]  ;;  %v174_v50 = vld [vmem:[#allocation5 + $0x130] sm:$0xff] }
  0x44   :  { %v268_v47 = vadd.f32 %v172_v45, %v76_v44  ;;  %362 = vst [vmem:[#allocation7 + $0x110] sm:$0xff] %v266_v42  ;;  %363 = vst [vmem:[#allocation7 + $0x118] sm:$0xff] %v267_v43  ;;  %v269_v51 = vadd.f32 %v173_v48, %v77_v46  ;;  %v270_v52 = vadd.f32 %v174_v50, %v78_v49  ;;  %v79_v53 = vld [vmem:[#allocation2 + $0x138] sm:$0xff]  ;;  %v80_v55 = vld [vmem:[#allocation2 + $0x140] sm:$0xff] }
  0x45   :  { %v175_v54 = vld [vmem:[#allocation5 + $0x138] sm:$0xff]  ;;  %v176_v57 = vld [vmem:[#allocation5 + $0x140] sm:$0xff]  ;;  %v81_v58 = vld [vmem:[#allocation2 + $0x148] sm:$0xff] }
  0x46   :  { %364 = vst [vmem:[#allocation7 + $0x120] sm:$0xff] %v268_v47  ;;  %v271_v56 = vadd.f32 %v175_v54, %v79_v53  ;;  %v177_v59 = vld [vmem:[#allocation5 + $0x148] sm:$0xff]  ;;  %365 = vst [vmem:[#allocation7 + $0x128] sm:$0xff] %v269_v51  ;;  %v272_v60 = vadd.f32 %v176_v57, %v80_v55  ;;  %v82_v62 = vld [vmem:[#allocation2 + $0x150] sm:$0xff] }
  0x47   :  { %366 = vst [vmem:[#allocation7 + $0x130] sm:$0xff] %v270_v52  ;;  %v273_v61 = vadd.f32 %v177_v59, %v81_v58  ;;  %v178_v63 = vld [vmem:[#allocation5 + $0x150] sm:$0xff]  ;;  %v83_v0 = vld [vmem:[#allocation2 + $0x158] sm:$0xff]  ;;  %v84_v3 = vld [vmem:[#allocation2 + $0x160] sm:$0xff] }
  0x48   :  { %367 = vst [vmem:[#allocation7 + $0x138] sm:$0xff] %v271_v56  ;;  %v274_v1 = vadd.f32 %v178_v63, %v82_v62  ;;  %v179_v2 = vld [vmem:[#allocation5 + $0x158] sm:$0xff]  ;;  %v180_v4 = vld [vmem:[#allocation5 + $0x160] sm:$0xff]  ;;  %368 = vst [vmem:[#allocation7 + $0x140] sm:$0xff] %v272_v60 }
  0x49   :  { %369 = vst [vmem:[#allocation7 + $0x148] sm:$0xff] %v273_v61  ;;  %v275_v5 = vadd.f32 %v179_v2, %v83_v0  ;;  %v276_v6 = vadd.f32 %v180_v4, %v84_v3  ;;  %v85_v7 = vld [vmem:[#allocation2 + $0x168] sm:$0xff]  ;;  %v86_v9 = vld [vmem:[#allocation2 + $0x170] sm:$0xff]  ;;  %v87_v12 = vld [vmem:[#allocation2 + $0x178] sm:$0xff] }
  0x4a   :  { %v181_v8 = vld [vmem:[#allocation5 + $0x168] sm:$0xff]  ;;  %370 = vst [vmem:[#allocation7 + $0x150] sm:$0xff] %v274_v1  ;;  %v182_v11 = vld [vmem:[#allocation5 + $0x170] sm:$0xff]  ;;  %v183_v13 = vld [vmem:[#allocation5 + $0x178] sm:$0xff] }
  0x4b   :  { %v277_v10 = vadd.f32 %v181_v8, %v85_v7  ;;  %371 = vst [vmem:[#allocation7 + $0x158] sm:$0xff] %v275_v5  ;;  %372 = vst [vmem:[#allocation7 + $0x160] sm:$0xff] %v276_v6  ;;  %v278_v14 = vadd.f32 %v182_v11, %v86_v9  ;;  %v279_v15 = vadd.f32 %v183_v13, %v87_v12  ;;  %v88_v16 = vld [vmem:[#allocation2 + $0x180] sm:$0xff]  ;;  %v89_v18 = vld [vmem:[#allocation2 + $0x188] sm:$0xff] }
  0x4c   :  { %v184_v17 = vld [vmem:[#allocation5 + $0x180] sm:$0xff]  ;;  %v185_v20 = vld [vmem:[#allocation5 + $0x188] sm:$0xff]  ;;  %v90_v21 = vld [vmem:[#allocation2 + $0x190] sm:$0xff] }
  0x4d   :  { %373 = vst [vmem:[#allocation7 + $0x168] sm:$0xff] %v277_v10  ;;  %v280_v19 = vadd.f32 %v184_v17, %v88_v16  ;;  %v186_v22 = vld [vmem:[#allocation5 + $0x190] sm:$0xff]  ;;  %374 = vst [vmem:[#allocation7 + $0x170] sm:$0xff] %v278_v14  ;;  %v281_v23 = vadd.f32 %v185_v20, %v89_v18  ;;  %v91_v25 = vld [vmem:[#allocation2 + $0x198] sm:$0xff] }
  0x4e   :  { %375 = vst [vmem:[#allocation7 + $0x178] sm:$0xff] %v279_v15  ;;  %v282_v24 = vadd.f32 %v186_v22, %v90_v21  ;;  %v187_v26 = vld [vmem:[#allocation5 + $0x198] sm:$0xff]  ;;  %v92_v27 = vld [vmem:[#allocation2 + $0x1a0] sm:$0xff]  ;;  %v93_v30 = vld [vmem:[#allocation2 + $0x1a8] sm:$0xff] }
  0x4f   :  { %376 = vst [vmem:[#allocation7 + $0x180] sm:$0xff] %v280_v19  ;;  %v283_v28 = vadd.f32 %v187_v26, %v91_v25  ;;  %v188_v29 = vld [vmem:[#allocation5 + $0x1a0] sm:$0xff]  ;;  %v189_v31 = vld [vmem:[#allocation5 + $0x1a8] sm:$0xff]  ;;  %377 = vst [vmem:[#allocation7 + $0x188] sm:$0xff] %v281_v23 }
  0x50   :  { %378 = vst [vmem:[#allocation7 + $0x190] sm:$0xff] %v282_v24  ;;  %v284_v32 = vadd.f32 %v188_v29, %v92_v27  ;;  %v285_v33 = vadd.f32 %v189_v31, %v93_v30  ;;  %v94_v34 = vld [vmem:[#allocation2 + $0x1b0] sm:$0xff]  ;;  %v95_v36 = vld [vmem:[#allocation2 + $0x1b8] sm:$0xff]  ;;  %v96_v39 = vld [vmem:[#allocation2 + $0x1c0] sm:$0xff] }
  0x51   :  { %v190_v35 = vld [vmem:[#allocation5 + $0x1b0] sm:$0xff]  ;;  %379 = vst [vmem:[#allocation7 + $0x198] sm:$0xff] %v283_v28  ;;  %v191_v38 = vld [vmem:[#allocation5 + $0x1b8] sm:$0xff]  ;;  %v192_v40 = vld [vmem:[#allocation5 + $0x1c0] sm:$0xff] }
  0x52   :  { %v286_v37 = vadd.f32 %v190_v35, %v94_v34  ;;  %380 = vst [vmem:[#allocation7 + $0x1a0] sm:$0xff] %v284_v32  ;;  %381 = vst [vmem:[#allocation7 + $0x1a8] sm:$0xff] %v285_v33  ;;  %v287_v41 = vadd.f32 %v191_v38, %v95_v36  ;;  %v288_v42 = vadd.f32 %v192_v40, %v96_v39  ;;  %v97_v43 = vld [vmem:[#allocation2 + $0x1c8] sm:$0xff]  ;;  %v98_v45 = vld [vmem:[#allocation2 + $0x1d0] sm:$0xff] }
  0x53   :  { %v193_v44 = vld [vmem:[#allocation5 + $0x1c8] sm:$0xff]  ;;  %v194_v47 = vld [vmem:[#allocation5 + $0x1d0] sm:$0xff]  ;;  %v99_v48 = vld [vmem:[#allocation2 + $0x1d8] sm:$0xff] }
  0x54   :  { %382 = vst [vmem:[#allocation7 + $0x1b0] sm:$0xff] %v286_v37  ;;  %v289_v46 = vadd.f32 %v193_v44, %v97_v43  ;;  %v195_v49 = vld [vmem:[#allocation5 + $0x1d8] sm:$0xff]  ;;  %383 = vst [vmem:[#allocation7 + $0x1b8] sm:$0xff] %v287_v41  ;;  %v290_v50 = vadd.f32 %v194_v47, %v98_v45  ;;  %v100_v52 = vld [vmem:[#allocation2 + $0x1e0] sm:$0xff] }
  0x55   :  { %384 = vst [vmem:[#allocation7 + $0x1c0] sm:$0xff] %v288_v42  ;;  %v291_v51 = vadd.f32 %v195_v49, %v99_v48  ;;  %v196_v53 = vld [vmem:[#allocation5 + $0x1e0] sm:$0xff]  ;;  %v101_v54 = vld [vmem:[#allocation2 + $0x1e8] sm:$0xff]  ;;  %v102_v57 = vld [vmem:[#allocation2 + $0x1f0] sm:$0xff] }
  0x56   :  { %385 = vst [vmem:[#allocation7 + $0x1c8] sm:$0xff] %v289_v46  ;;  %v292_v55 = vadd.f32 %v196_v53, %v100_v52  ;;  %v197_v56 = vld [vmem:[#allocation5 + $0x1e8] sm:$0xff]  ;;  %v198_v58 = vld [vmem:[#allocation5 + $0x1f0] sm:$0xff]  ;;  %386 = vst [vmem:[#allocation7 + $0x1d0] sm:$0xff] %v290_v50 }
  0x57   :  { %387 = vst [vmem:[#allocation7 + $0x1d8] sm:$0xff] %v291_v51  ;;  %v293_v59 = vadd.f32 %v197_v56, %v101_v54  ;;  %v294_v60 = vadd.f32 %v198_v58, %v102_v57  ;;  %v103_v61 = vld [vmem:[#allocation2 + $0x1f8] sm:$0xff]  ;;  %v104_v63 = vld [vmem:[#allocation2 + $0x200] sm:$0xff]  ;;  %v105_v2 = vld [vmem:[#allocation2 + $0x208] sm:$0xff] }
  0x58   :  { %v199_v62 = vld [vmem:[#allocation5 + $0x1f8] sm:$0xff]  ;;  %388 = vst [vmem:[#allocation7 + $0x1e0] sm:$0xff] %v292_v55  ;;  %v200_v1 = vld [vmem:[#allocation5 + $0x200] sm:$0xff]  ;;  %v201_v3 = vld [vmem:[#allocation5 + $0x208] sm:$0xff] }
  0x59   :  { %v295_v0 = vadd.f32 %v199_v62, %v103_v61  ;;  %389 = vst [vmem:[#allocation7 + $0x1e8] sm:$0xff] %v293_v59  ;;  %390 = vst [vmem:[#allocation7 + $0x1f0] sm:$0xff] %v294_v60  ;;  %v296_v4 = vadd.f32 %v200_v1, %v104_v63  ;;  %v297_v5 = vadd.f32 %v201_v3, %v105_v2  ;;  %v106_v6 = vld [vmem:[#allocation2 + $0x210] sm:$0xff]  ;;  %v107_v8 = vld [vmem:[#allocation2 + $0x218] sm:$0xff] }
  0x5a   :  { %v202_v7 = vld [vmem:[#allocation5 + $0x210] sm:$0xff]  ;;  %v203_v10 = vld [vmem:[#allocation5 + $0x218] sm:$0xff]  ;;  %v108_v11 = vld [vmem:[#allocation2 + $0x220] sm:$0xff] }
  0x5b   :  { %391 = vst [vmem:[#allocation7 + $0x1f8] sm:$0xff] %v295_v0  ;;  %v298_v9 = vadd.f32 %v202_v7, %v106_v6  ;;  %v204_v12 = vld [vmem:[#allocation5 + $0x220] sm:$0xff]  ;;  %392 = vst [vmem:[#allocation7 + $0x200] sm:$0xff] %v296_v4  ;;  %v299_v13 = vadd.f32 %v203_v10, %v107_v8  ;;  %v109_v15 = vld [vmem:[#allocation2 + $0x228] sm:$0xff] }
  0x5c   :  { %393 = vst [vmem:[#allocation7 + $0x208] sm:$0xff] %v297_v5  ;;  %v300_v14 = vadd.f32 %v204_v12, %v108_v11  ;;  %v205_v16 = vld [vmem:[#allocation5 + $0x228] sm:$0xff]  ;;  %v110_v17 = vld [vmem:[#allocation2 + $0x230] sm:$0xff]  ;;  %v111_v20 = vld [vmem:[#allocation2 + $0x238] sm:$0xff] }
  0x5d   :  { %394 = vst [vmem:[#allocation7 + $0x210] sm:$0xff] %v298_v9  ;;  %v301_v18 = vadd.f32 %v205_v16, %v109_v15  ;;  %v206_v19 = vld [vmem:[#allocation5 + $0x230] sm:$0xff]  ;;  %v207_v21 = vld [vmem:[#allocation5 + $0x238] sm:$0xff]  ;;  %395 = vst [vmem:[#allocation7 + $0x218] sm:$0xff] %v299_v13 }
  0x5e   :  { %396 = vst [vmem:[#allocation7 + $0x220] sm:$0xff] %v300_v14  ;;  %v302_v22 = vadd.f32 %v206_v19, %v110_v17  ;;  %v303_v23 = vadd.f32 %v207_v21, %v111_v20  ;;  %v112_v24 = vld [vmem:[#allocation2 + $0x240] sm:$0xff]  ;;  %v113_v26 = vld [vmem:[#allocation2 + $0x248] sm:$0xff]  ;;  %v114_v29 = vld [vmem:[#allocation2 + $0x250] sm:$0xff] }
  0x5f   :  { %v208_v25 = vld [vmem:[#allocation5 + $0x240] sm:$0xff]  ;;  %397 = vst [vmem:[#allocation7 + $0x228] sm:$0xff] %v301_v18  ;;  %v209_v28 = vld [vmem:[#allocation5 + $0x248] sm:$0xff]  ;;  %v210_v30 = vld [vmem:[#allocation5 + $0x250] sm:$0xff] }
  0x60   :  { %v304_v27 = vadd.f32 %v208_v25, %v112_v24  ;;  %398 = vst [vmem:[#allocation7 + $0x230] sm:$0xff] %v302_v22  ;;  %399 = vst [vmem:[#allocation7 + $0x238] sm:$0xff] %v303_v23  ;;  %v305_v31 = vadd.f32 %v209_v28, %v113_v26  ;;  %v306_v32 = vadd.f32 %v210_v30, %v114_v29  ;;  %v115_v33 = vld [vmem:[#allocation2 + $0x258] sm:$0xff]  ;;  %v116_v35 = vld [vmem:[#allocation2 + $0x260] sm:$0xff] }
  0x61   :  { %v211_v34 = vld [vmem:[#allocation5 + $0x258] sm:$0xff]  ;;  %v212_v37 = vld [vmem:[#allocation5 + $0x260] sm:$0xff]  ;;  %v117_v38 = vld [vmem:[#allocation2 + $0x268] sm:$0xff] }
  0x62   :  { %400 = vst [vmem:[#allocation7 + $0x240] sm:$0xff] %v304_v27  ;;  %v307_v36 = vadd.f32 %v211_v34, %v115_v33  ;;  %v213_v39 = vld [vmem:[#allocation5 + $0x268] sm:$0xff]  ;;  %401 = vst [vmem:[#allocation7 + $0x248] sm:$0xff] %v305_v31  ;;  %v308_v40 = vadd.f32 %v212_v37, %v116_v35  ;;  %v118_v42 = vld [vmem:[#allocation2 + $0x270] sm:$0xff] }
  0x63   :  { %402 = vst [vmem:[#allocation7 + $0x250] sm:$0xff] %v306_v32  ;;  %v309_v41 = vadd.f32 %v213_v39, %v117_v38  ;;  %v214_v43 = vld [vmem:[#allocation5 + $0x270] sm:$0xff]  ;;  %v119_v44 = vld [vmem:[#allocation2 + $0x278] sm:$0xff]  ;;  %v120_v47 = vld [vmem:[#allocation2 + $0x280] sm:$0xff] }
  0x64   :  { %403 = vst [vmem:[#allocation7 + $0x258] sm:$0xff] %v307_v36  ;;  %v310_v45 = vadd.f32 %v214_v43, %v118_v42  ;;  %v215_v46 = vld [vmem:[#allocation5 + $0x278] sm:$0xff]  ;;  %v216_v48 = vld [vmem:[#allocation5 + $0x280] sm:$0xff]  ;;  %404 = vst [vmem:[#allocation7 + $0x260] sm:$0xff] %v308_v40 }
  0x65   :  { %405 = vst [vmem:[#allocation7 + $0x268] sm:$0xff] %v309_v41  ;;  %v311_v49 = vadd.f32 %v215_v46, %v119_v44  ;;  %v312_v50 = vadd.f32 %v216_v48, %v120_v47  ;;  %v121_v51 = vld [vmem:[#allocation2 + $0x288] sm:$0xff]  ;;  %v122_v53 = vld [vmem:[#allocation2 + $0x290] sm:$0xff]  ;;  %v123_v56 = vld [vmem:[#allocation2 + $0x298] sm:$0xff] }
  0x66   :  { %v217_v52 = vld [vmem:[#allocation5 + $0x288] sm:$0xff]  ;;  %406 = vst [vmem:[#allocation7 + $0x270] sm:$0xff] %v310_v45  ;;  %v218_v55 = vld [vmem:[#allocation5 + $0x290] sm:$0xff]  ;;  %v219_v57 = vld [vmem:[#allocation5 + $0x298] sm:$0xff] }
  0x67   :  { %v313_v54 = vadd.f32 %v217_v52, %v121_v51  ;;  %407 = vst [vmem:[#allocation7 + $0x278] sm:$0xff] %v311_v49  ;;  %408 = vst [vmem:[#allocation7 + $0x280] sm:$0xff] %v312_v50  ;;  %v314_v58 = vadd.f32 %v218_v55, %v122_v53  ;;  %v315_v59 = vadd.f32 %v219_v57, %v123_v56  ;;  %v124_v60 = vld [vmem:[#allocation2 + $0x2a0] sm:$0xff]  ;;  %v125_v62 = vld [vmem:[#allocation2 + $0x2a8] sm:$0xff] }
  0x68   :  { %v220_v61 = vld [vmem:[#allocation5 + $0x2a0] sm:$0xff]  ;;  %v221_v0 = vld [vmem:[#allocation5 + $0x2a8] sm:$0xff]  ;;  %v126_v1 = vld [vmem:[#allocation2 + $0x2b0] sm:$0xff] }
  0x69   :  { %409 = vst [vmem:[#allocation7 + $0x288] sm:$0xff] %v313_v54  ;;  %v316_v63 = vadd.f32 %v220_v61, %v124_v60  ;;  %v222_v2 = vld [vmem:[#allocation5 + $0x2b0] sm:$0xff]  ;;  %410 = vst [vmem:[#allocation7 + $0x290] sm:$0xff] %v314_v58  ;;  %v317_v3 = vadd.f32 %v221_v0, %v125_v62  ;;  %v127_v5 = vld [vmem:[#allocation2 + $0x2b8] sm:$0xff] }
  0x6a   :  { %411 = vst [vmem:[#allocation7 + $0x298] sm:$0xff] %v315_v59  ;;  %v318_v4 = vadd.f32 %v222_v2, %v126_v1  ;;  %v223_v6 = vld [vmem:[#allocation5 + $0x2b8] sm:$0xff]  ;;  %v128_v7 = vld [vmem:[#allocation2 + $0x2c0] sm:$0xff]  ;;  %v129_v10 = vld [vmem:[#allocation2 + $0x2c8] sm:$0xff] }
  0x6b   :  { %412 = vst [vmem:[#allocation7 + $0x2a0] sm:$0xff] %v316_v63  ;;  %v319_v8 = vadd.f32 %v223_v6, %v127_v5  ;;  %v224_v9 = vld [vmem:[#allocation5 + $0x2c0] sm:$0xff]  ;;  %v225_v11 = vld [vmem:[#allocation5 + $0x2c8] sm:$0xff]  ;;  %413 = vst [vmem:[#allocation7 + $0x2a8] sm:$0xff] %v317_v3 }
  0x6c   :  { %414 = vst [vmem:[#allocation7 + $0x2b0] sm:$0xff] %v318_v4  ;;  %v320_v12 = vadd.f32 %v224_v9, %v128_v7  ;;  %v321_v13 = vadd.f32 %v225_v11, %v129_v10  ;;  %v130_v14 = vld [vmem:[#allocation2 + $0x2d0] sm:$0xff]  ;;  %v131_v16 = vld [vmem:[#allocation2 + $0x2d8] sm:$0xff]  ;;  %v132_v19 = vld [vmem:[#allocation2 + $0x2e0] sm:$0xff] }
  0x6d   :  { %v226_v15 = vld [vmem:[#allocation5 + $0x2d0] sm:$0xff]  ;;  %415 = vst [vmem:[#allocation7 + $0x2b8] sm:$0xff] %v319_v8  ;;  %v227_v18 = vld [vmem:[#allocation5 + $0x2d8] sm:$0xff]  ;;  %v228_v20 = vld [vmem:[#allocation5 + $0x2e0] sm:$0xff] }
  0x6e   :  { %v322_v17 = vadd.f32 %v226_v15, %v130_v14  ;;  %416 = vst [vmem:[#allocation7 + $0x2c0] sm:$0xff] %v320_v12  ;;  %417 = vst [vmem:[#allocation7 + $0x2c8] sm:$0xff] %v321_v13  ;;  %v323_v21 = vadd.f32 %v227_v18, %v131_v16  ;;  %v324_v22 = vadd.f32 %v228_v20, %v132_v19  ;;  %v133_v23 = vld [vmem:[#allocation2 + $0x2e8] sm:$0xff]  ;;  %v134_v25 = vld [vmem:[#allocation2 + $0x2f0] sm:$0xff] }
  0x6f   :  { %v229_v24 = vld [vmem:[#allocation5 + $0x2e8] sm:$0xff]  ;;  %v230_v27 = vld [vmem:[#allocation5 + $0x2f0] sm:$0xff]  ;;  %v135_v28 = vld [vmem:[#allocation2 + $0x2f8] sm:$0xff] }
  0x70   :  { %418 = vst [vmem:[#allocation7 + $0x2d0] sm:$0xff] %v322_v17  ;;  %v325_v26 = vadd.f32 %v229_v24, %v133_v23  ;;  %v231_v29 = vld [vmem:[#allocation5 + $0x2f8] sm:$0xff]  ;;  %419 = vst [vmem:[#allocation7 + $0x2d8] sm:$0xff] %v323_v21  ;;  %v326_v30 = vadd.f32 %v230_v27, %v134_v25 }
  0x71   :  { %420 = vst [vmem:[#allocation7 + $0x2e0] sm:$0xff] %v324_v22  ;;  %v327_v31 = vadd.f32 %v231_v29, %v135_v28 }
  0x72   :  { %421 = vst [vmem:[#allocation7 + $0x2e8] sm:$0xff] %v325_v26  ;;  %422 = vst [vmem:[#allocation7 + $0x2f0] sm:$0xff] %v326_v30 }
  0x73   :  { %423 = vst [vmem:[#allocation7 + $0x2f8] sm:$0xff] %v327_v31 }
  0x74   :  { %502 = shalt.err (!%p499_p6)
}
  0x75   :  { %s503_s10 = scalar_lea.hbm %s586_s2, 12288 }
  0x76   :  { %p504_p7 = scmp.ne.s32.totalorder %s586_s2, %s503_s10  ;;  %p507_p8 = scmp.lt.u32.totalorder %s503_s10, %s586_s2 }
  0x78   :  { %p509_p9 = pnand %p507_p8, %p504_p7 }
  0x7a   :  { %512 = shalt.err (!%p509_p9)
}
  0x7b   :  { %435 = dma.vmem_to_hbm [thread:$0]  %s430_s6, 12288, %s586_s2, [#allocation4], %s520_s19, %s520_s19, %s521_s20  }
  0x7c   :  { %517 = dma.done.wait [#allocation4], 12288  }
  0x7d   :  { %518 = vsyncadd [#allocation4], 4294955008 }
  0x7e   :  { %439 = vsyncpa [#allocation3], 1 }
  0x7f   :  { %440 = vsyncpa [#allocation6], 1 }
  0x80   :  { %441 = vsyncpa [#allocation4], 1 }

</bundles_post_ra>
